<compile_context>
chip_gen: v7x
topology: tpu7x:2x2x1
jax: 0.10.0
libtpu: 0.0.40
codegen_flags: <defaults>
</compile_context>

<pallas_src>
import jax
import jax.numpy as jnp
from jax.experimental import pallas as pl
from jax.experimental.pallas import tpu as pltpu

PREDICTION_VECTOR_DIMS = 32   # D (module constant)
NEG_SLOPE = 0.01              # nn.LeakyReLU default negative_slope


def _leaky_relu(x):
    return jnp.where(x > 0, x, NEG_SLOPE * x)


def _round_up(x, m):
    return (x + m - 1) // m * m


def predict_output_kernel(x_ref, w1_ref, b1_ref, w2_ref, b2_ref, w3_ref, b3_ref, o_ref):
    # x_ref: (TB, D) tile of the batch; weights/biases are full resident blocks.
    x = x_ref[...]
    if x.dtype != jnp.float32:          # no-op cast removed when input is f32
        x = x.astype(jnp.float32)

    h1 = jnp.dot(x, w1_ref[...], preferred_element_type=jnp.float32) + b1_ref[...]
    h1 = _leaky_relu(h1)

    h2 = jnp.dot(h1, w2_ref[...], preferred_element_type=jnp.float32) + b2_ref[...]
    h2 = _leaky_relu(h2)

    # Final Linear(D -> 1) restructured as multiply + lane-reduce so the output
    # is a lane-dense (TB//128, 128) slab instead of a (TB, 1) column of masked
    # partial stores.  The (TB, D) -> (TB//128, 128, D) reshape only splits the
    # leading (sublane) axis, so it is layout-free.
    g, lanes = o_ref.shape              # (TB // 128, 128)
    d = h2.shape[1]
    h2p = h2.reshape(g, lanes, d)
    out = jnp.sum(h2p * w3_ref[...], axis=-1) + b3_ref[0]   # (g, 128)
    o_ref[...] = out.astype(o_ref.dtype)


def predict_output(pred_vec, params, *, batch_tile=2048):
    """pred_vec: (B, D).  params: w1 (D,D), b1 (1,D), w2 (D,D), b2 (1,D),
    w3 (1,D) (PyTorch (out,in) layout of the last Linear), b3 (1,)."""
    B, D = pred_vec.shape
    w1, b1, w2, b2, w3, b3 = (params[k] for k in ("w1", "b1", "w2", "b2", "w3", "b3"))

    # Tile sizing:
    #  * tile rows are a multiple of 128 so the packed output block is lane-dense,
    #  * if more than one grid step is needed, tile is a multiple of 1024 so the
    #    packed out block's sublane dim (tile // 128) is a multiple of 8.
    b_ceil128 = _round_up(B, 128)
    if b_ceil128 <= batch_tile:
        tile = b_ceil128                       # single grid step: block == full array
    else:
        tile = _round_up(batch_tile, 1024)
    B_pad = _round_up(B, tile)

    x = pred_vec
    if B_pad != B:
        x = jnp.pad(x, ((0, B_pad - B), (0, 0)))   # ragged tail handled by padding

    grid = (B_pad // tile,)
    full = lambda i: (0, 0)

    in_specs = [
        pl.BlockSpec((tile, D), lambda i: (i, 0)),           # x   (tiled over batch)
        pl.BlockSpec((D, D), full),                          # w1  (resident in VMEM)
        pl.BlockSpec((1, D), full),                          # b1
        pl.BlockSpec((D, D), full),                          # w2
        pl.BlockSpec((1, D), full),                          # b2
        pl.BlockSpec((1, D), full),                          # w3  (row form)
        pl.BlockSpec(memory_space=pltpu.MemorySpace.SMEM),   # b3  scalar in SMEM
    ]
    out_spec = pl.BlockSpec((tile // 128, 128), lambda i: (i, 0))

    # Advisory cost hint: two DxD matmuls + final reduce + leaky-relus per row.
    flops = int(B_pad) * (2 * 2 * D * D + 2 * D + 4 * D)
    bytes_accessed = (B_pad * D + B_pad + 2 * D * D + 3 * D + 1) * 4
    cost = pl.CostEstimate(flops=flops, transcendentals=0, bytes_accessed=bytes_accessed)

    out_packed = pl.pallas_call(
        predict_output_kernel,
        out_shape=jax.ShapeDtypeStruct((B_pad // 128, 128), pred_vec.dtype),
        grid_spec=pltpu.PrefetchScalarGridSpec(
            num_scalar_prefetch=0,
            grid=grid,
            in_specs=in_specs,
            out_specs=out_spec,
        ),
        compiler_params=pltpu.CompilerParams(
            dimension_semantics=("parallel",),
            # Default scoped VMEM is plenty (double-buffered x at tile=8192 is
            # ~2 MB); only set vmem_limit_bytes for >32K-row tiles on v5e.
        ),
        cost_estimate=cost,
    )(x, w1, b1, w2, b2, w3, b3)

    # Unpack lane-dense (B_pad//128, 128) slab back to (B, 1).
    return out_packed.reshape(B_pad, 1)[:B]


def init_params(key, D):
    """Deterministic synthetic init (shapes match the module's nn.Linear layers)."""
    ks = jax.random.split(key, 6)
    scale = 1.0 / jnp.sqrt(D)
    w1 = jax.random.uniform(ks[0], (D, D), jnp.float32, -scale, scale)  # (in, out)
    b1 = jax.random.uniform(ks[1], (1, D), jnp.float32, -scale, scale)
    w2 = jax.random.uniform(ks[2], (D, D), jnp.float32, -scale, scale)  # (in, out)
    b2 = jax.random.uniform(ks[3], (1, D), jnp.float32, -scale, scale)
    w3 = jax.random.uniform(ks[4], (1, D), jnp.float32, -scale, scale)  # PyTorch (out, in)
    b3 = jax.random.uniform(ks[5], (1,), jnp.float32, -scale, scale)
    return dict(w1=w1, b1=b1, w2=w2, b2=b2, w3=w3, b3=b3)


def reference(pred_vec, p):
    h1 = _leaky_relu(pred_vec @ p["w1"] + p["b1"])
    h2 = _leaky_relu(h1 @ p["w2"] + p["b2"])
    return h2 @ p["w3"].T + p["b3"][None, :]


if __name__ == "__main__":
    D = PREDICTION_VECTOR_DIMS
    B = 8   # small demo batch; wrapper pads to a lane-dense multiple internally

    key = jax.random.PRNGKey(0)
    k_x, k_p = jax.random.split(key)
    pred_vec = jax.random.normal(k_x, (B, D), jnp.float32)
    params = init_params(k_p, D)

    out = predict_output(pred_vec, params)
    out = jax.block_until_ready(out)

    ref = reference(pred_vec, params)
    assert out.shape == (B, 1), out.shape
    assert jnp.allclose(out, ref, atol=1e-5, rtol=1e-5), (
        float(jnp.max(jnp.abs(out - ref)))
    )
    print("KERNEL_OK")
</pallas_src>

<mosaic_0001>
module attributes {stable_mosaic.version = 11 : i64} {
  func.func @predict_output_kernel(%arg0: i32, %arg1: memref<128x32xf32, #tpu.memory_space<vmem>>, %arg2: memref<32x32xf32, #tpu.memory_space<vmem>>, %arg3: memref<1x32xf32, #tpu.memory_space<vmem>>, %arg4: memref<32x32xf32, #tpu.memory_space<vmem>>, %arg5: memref<1x32xf32, #tpu.memory_space<vmem>>, %arg6: memref<1x32xf32, #tpu.memory_space<vmem>>, %arg7: memref<1xf32, #tpu.memory_space<smem>>, %arg8: memref<1x128xf32, #tpu.memory_space<vmem>>) attributes {dimension_semantics = [#tpu.dimension_semantics<parallel>], iteration_bounds = array<i64: 1>, scalar_prefetch = 0 : i64, scratch_operands = 0 : i64, tpu.core_type = #tpu.core_type<tc>, window_params = [{transform_indices = @transform_0, window_bounds = array<i64: 128, 32>}, {pipeline_mode = #tpu.pipeline_mode<synchronous>, transform_indices = @transform_1, window_bounds = array<i64: 32, 32>}, {pipeline_mode = #tpu.pipeline_mode<synchronous>, transform_indices = @transform_2, window_bounds = array<i64: 1, 32>}, {pipeline_mode = #tpu.pipeline_mode<synchronous>, transform_indices = @transform_3, window_bounds = array<i64: 32, 32>}, {pipeline_mode = #tpu.pipeline_mode<synchronous>, transform_indices = @transform_4, window_bounds = array<i64: 1, 32>}, {pipeline_mode = #tpu.pipeline_mode<synchronous>, transform_indices = @transform_5, window_bounds = array<i64: 1, 32>}, {transform_indices = @transform_6, window_bounds = array<i64: 1>}, {transform_indices = @transform_7, window_bounds = array<i64: 1, 128>}]} {
    %c0 = arith.constant 0 : index
    %c0_0 = arith.constant 0 : index
    %0 = vector.load %arg1[%c0, %c0_0] : memref<128x32xf32, #tpu.memory_space<vmem>>, vector<128x32xf32>
    %c0_1 = arith.constant 0 : index
    %c0_2 = arith.constant 0 : index
    %1 = vector.load %arg2[%c0_1, %c0_2] : memref<32x32xf32, #tpu.memory_space<vmem>>, vector<32x32xf32>
    %cst = arith.constant dense<0.000000e+00> : vector<128x32xf32>
    %2 = tpu.matmul %0, %1, %cst {dimension_numbers = #tpu.dot_dimension_numbers<[1], [0], [0], [1], [0, 0, 1, 1], [], []>} : vector<128x32xf32>, vector<32x32xf32>, vector<128x32xf32> -> vector<128x32xf32>
    %c0_3 = arith.constant 0 : index
    %c0_4 = arith.constant 0 : index
    %3 = vector.load %arg3[%c0_3, %c0_4] : memref<1x32xf32, #tpu.memory_space<vmem>>, vector<1x32xf32>
    %4 = vector.broadcast %3 : vector<1x32xf32> to vector<128x32xf32>
    %5 = arith.addf %2, %4 : vector<128x32xf32>
    %cst_5 = arith.constant 0.000000e+00 : f32
    %6 = vector.broadcast %cst_5 : f32 to vector<128x32xf32>
    %7 = arith.cmpf ogt, %5, %6 : vector<128x32xf32>
    %cst_6 = arith.constant 0.00999999977 : f32
    %8 = vector.broadcast %cst_6 : f32 to vector<128x32xf32>
    %9 = arith.mulf %8, %5 : vector<128x32xf32>
    %10 = arith.select %7, %5, %9 : vector<128x32xi1>, vector<128x32xf32>
    %c0_7 = arith.constant 0 : index
    %c0_8 = arith.constant 0 : index
    %11 = vector.load %arg4[%c0_7, %c0_8] : memref<32x32xf32, #tpu.memory_space<vmem>>, vector<32x32xf32>
    %cst_9 = arith.constant dense<0.000000e+00> : vector<128x32xf32>
    %12 = tpu.matmul %10, %11, %cst_9 {dimension_numbers = #tpu.dot_dimension_numbers<[1], [0], [0], [1], [0, 0, 1, 1], [], []>} : vector<128x32xf32>, vector<32x32xf32>, vector<128x32xf32> -> vector<128x32xf32>
    %c0_10 = arith.constant 0 : index
    %c0_11 = arith.constant 0 : index
    %13 = vector.load %arg5[%c0_10, %c0_11] : memref<1x32xf32, #tpu.memory_space<vmem>>, vector<1x32xf32>
    %14 = vector.broadcast %13 : vector<1x32xf32> to vector<128x32xf32>
    %15 = arith.addf %12, %14 : vector<128x32xf32>
    %cst_12 = arith.constant 0.000000e+00 : f32
    %16 = vector.broadcast %cst_12 : f32 to vector<128x32xf32>
    %17 = arith.cmpf ogt, %15, %16 : vector<128x32xf32>
    %cst_13 = arith.constant 0.00999999977 : f32
    %18 = vector.broadcast %cst_13 : f32 to vector<128x32xf32>
    %19 = arith.mulf %18, %15 : vector<128x32xf32>
    %20 = arith.select %17, %15, %19 : vector<128x32xi1>, vector<128x32xf32>
    %21 = vector.shape_cast %20 : vector<128x32xf32> to vector<1x128x32xf32>
    %c0_14 = arith.constant 0 : index
    %c0_15 = arith.constant 0 : index
    %22 = vector.load %arg6[%c0_14, %c0_15] : memref<1x32xf32, #tpu.memory_space<vmem>>, vector<1x32xf32>
    %23 = vector.shape_cast %22 : vector<1x32xf32> to vector<1x1x32xf32>
    %24 = vector.broadcast %23 : vector<1x1x32xf32> to vector<1x128x32xf32>
    %25 = arith.mulf %21, %24 : vector<1x128x32xf32>
    %cst_16 = arith.constant dense<0.000000e+00> : vector<1x128xf32>
    %26 = vector.multi_reduction <add>, %25, %cst_16 [2] : vector<1x128x32xf32> to vector<1x128xf32>
    %c0_17 = arith.constant 0 : index
    %27 = memref.load %arg7[%c0_17] : memref<1xf32, #tpu.memory_space<smem>>
    %28 = vector.broadcast %27 : f32 to vector<1x128xf32>
    %29 = arith.addf %26, %28 : vector<1x128xf32>
    %c0_18 = arith.constant 0 : index
    %c0_19 = arith.constant 0 : index
    %30 = vector.load %arg8[%c0_18, %c0_19] : memref<1x128xf32, #tpu.memory_space<vmem>>, vector<1x128xf32>
    tpu.vector_store %arg8[%c0_18, %c0_19], %29 {strides = array<i32>} : memref<1x128xf32, #tpu.memory_space<vmem>>, vector<1x128xf32>,
    return
  }
  func.func @transform_0(%arg0: i32) -> (i32, i32) {
    %c0_i32 = arith.constant 0 : i32
    %c0_i32_0 = arith.constant 0 : i32
    return %arg0, %c0_i32 : i32, i32
  }
  func.func @transform_1(%arg0: i32) -> (i32, i32) {
    %c0_i32 = arith.constant 0 : i32
    %c0_i32_0 = arith.constant 0 : i32
    %c0_i32_1 = arith.constant 0 : i32
    return %c0_i32, %c0_i32_0 : i32, i32
  }
  func.func @transform_2(%arg0: i32) -> (i32, i32) {
    %c0_i32 = arith.constant 0 : i32
    %c0_i32_0 = arith.constant 0 : i32
    %c0_i32_1 = arith.constant 0 : i32
    return %c0_i32, %c0_i32_0 : i32, i32
  }
  func.func @transform_3(%arg0: i32) -> (i32, i32) {
    %c0_i32 = arith.constant 0 : i32
    %c0_i32_0 = arith.constant 0 : i32
    %c0_i32_1 = arith.constant 0 : i32
    return %c0_i32, %c0_i32_0 : i32, i32
  }
  func.func @transform_4(%arg0: i32) -> (i32, i32) {
    %c0_i32 = arith.constant 0 : i32
    %c0_i32_0 = arith.constant 0 : i32
    %c0_i32_1 = arith.constant 0 : i32
    return %c0_i32, %c0_i32_0 : i32, i32
  }
  func.func @transform_5(%arg0: i32) -> (i32, i32) {
    %c0_i32 = arith.constant 0 : i32
    %c0_i32_0 = arith.constant 0 : i32
    %c0_i32_1 = arith.constant 0 : i32
    return %c0_i32, %c0_i32_0 : i32, i32
  }
  func.func @transform_6(%arg0: i32) -> i32 {
    %c0_i32 = arith.constant 0 : i32
    %c0_i32_0 = arith.constant 0 : i32
    return %c0_i32 : i32
  }
  func.func @transform_7(%arg0: i32) -> (i32, i32) {
    %c0_i32 = arith.constant 0 : i32
    %c0_i32_0 = arith.constant 0 : i32
    return %arg0, %c0_i32 : i32, i32
  }
}

</mosaic_0001>

<bundles_post_ra>
// kernel: tpu_custom_call.1
= control target key start
LH: loop header
LB: loop body
LE: loop exit
PB: predicated region body
PF: predicated region fallthrough
CT: control target
= control target key end

     0   :  { %vm55_vm0 = vcmask 261120   ;;  %s1255_s0 = inlined_call_operand.vmem [shape: f32[128,32], index: 0, kind: input, shape index: {}]   ;;  %s1256_s1 = inlined_call_operand.vmem [shape: f32[32,32], index: 1, kind: input, shape index: {}]   ;;  %s1257_s2 = inlined_call_operand.vmem [shape: f32[1,32], index: 2, kind: input, shape index: {}]   ;;  %s1258_s3 = inlined_call_operand.vmem [shape: f32[32,32], index: 3, kind: input, shape index: {}]   ;;  %s1259_s4 = inlined_call_operand.vmem [shape: f32[1,32], index: 4, kind: input, shape index: {}]   ;;  %s1260_s5 = inlined_call_operand.vmem [shape: f32[1,32], index: 5, kind: input, shape index: {}]   ;;  %s1261_s6 = inlined_call_operand.<no memory space> [shape: f32[1], index: 6, kind: input, shape index: {}]   ;;  %s1262_s7 = inlined_call_operand.hbm [shape: f32[1,128], index: 7, kind: output, shape index: {}]  }
   0x1   :  { %v44_v0 = vld [vmem:[%s1256_s1] sm:$0xff]  ;;  %v45_v1 = vld [vmem:[%s1256_s1 + $0x8] sm:$0xff]  ;;  %v46_v2 = vld [vmem:[%s1256_s1 + $0x10] sm:$0xff] }
   0x2   :  { %v920_v3 = vpack.c.bf16 %v45_v1, %v44_v0  ;;  %v47_v4 = vld [vmem:[%s1256_s1 + $0x18] sm:$0xff]  ;;  %v28_v5 = vld [vmem:[%s1255_s0] sm:$0xff] }
   0x3   :  { %v924_v6 = vpack.c.bf16 %v47_v4, %v46_v2  ;;  %864 = vmatprep.mubr.msk.f32.mxu0 %vm55_vm0, %v28_v5 }
   0x4   :  { %921 = vmatprep.subr.bf16.mxu0 %v920_v3 }
   0x5   :  { %923 = vmatpush3.bf16.msra.mxu0 %v920_v3 }
   0x6   :  { %925 = vmatprep.subr.bf16.mxu0 %v924_v6 }
   0x7   :  { %13 = vsyncpa [#allocation4], 0  ;;  %v29_v7 = vld [vmem:[%s1255_s0 + $0x8] sm:$0xff]  ;;  %v30_v8 = vld [vmem:[%s1255_s0 + $0x10] sm:$0xff] }
   0x8   :  { %v31_v9 = vld [vmem:[%s1255_s0 + $0x18] sm:$0xff]  ;;  %v32_v10 = vld [vmem:[%s1255_s0 + $0x20] sm:$0xff]  ;;  %v33_v11 = vld [vmem:[%s1255_s0 + $0x28] sm:$0xff] }
   0x9   :  { %927 = vmatpush3.bf16.msra.mxu0 %v924_v6  ;;  %v34_v12 = vld [vmem:[%s1255_s0 + $0x30] sm:$0xff]  ;;  %v35_v13 = vld [vmem:[%s1255_s0 + $0x38] sm:$0xff]  ;;  %v36_v14 = vld [vmem:[%s1255_s0 + $0x40] sm:$0xff] }
   0xa   :  { %v37_v15 = vld [vmem:[%s1255_s0 + $0x48] sm:$0xff]  ;;  %v38_v16 = vld [vmem:[%s1255_s0 + $0x50] sm:$0xff]  ;;  %v39_v17 = vld [vmem:[%s1255_s0 + $0x58] sm:$0xff] }
   0xb   :  { %v40_v18 = vld [vmem:[%s1255_s0 + $0x60] sm:$0xff]  ;;  %v41_v19 = vld [vmem:[%s1255_s0 + $0x68] sm:$0xff]  ;;  %v42_v20 = vld [vmem:[%s1255_s0 + $0x70] sm:$0xff] }
   0xc   :  { %865 = vmatmul.mubr.msk.f32.vlgmr.msra.gmra.mrb[0].mxu0 %vm55_vm0, %v29_v7  ;;  %v43_v21 = vld [vmem:[%s1255_s0 + $0x78] sm:$0xff]  ;;  %v297_v22 = vld [vmem:[%s1258_s3] sm:$0xff]  ;;  %v298_v23 = vld [vmem:[%s1258_s3 + $0x8] sm:$0xff] }
   0xd   :  { %867 = vmatprep.mubr.msk.f32.mxu0 %vm55_vm0, %v30_v8  ;;  %v928_v24 = vpack.c.bf16 %v298_v23, %v297_v22  ;;  %v299_v25 = vld [vmem:[%s1258_s3 + $0x10] sm:$0xff]  ;;  %v300_v26 = vld [vmem:[%s1258_s3 + $0x18] sm:$0xff]  ;;  %v1093_v28 = vld [vmem:[%s1257_s2] ss:$0 sm:$0xff] }
   0xe   :  { %v932_v27 = vpack.c.bf16 %v300_v26, %v299_v25 }
   0xf   :  { %929 = vmatprep.subr.bf16.mxu1 %v928_v24 }
  0x10   :  { %868 = vmatmul.mubr.msk.f32.gmra.mrb[2].mxu0 %vm55_vm0, %v31_v9  ;;  %931 = vmatpush3.bf16.msra.mxu1 %v928_v24 }
  0x11   :  { %870 = vmatprep.mubr.msk.f32.mxu0 %vm55_vm0, %v32_v10  ;;  %933 = vmatprep.subr.bf16.mxu1 %v932_v27 }
  0x14   :  { %871 = vmatmul.mubr.msk.f32.gmra.mrb[4].mxu0 %vm55_vm0, %v33_v11  ;;  %935 = vmatpush3.bf16.msra.mxu1 %v932_v27 }
  0x15   :  { %873 = vmatprep.mubr.msk.f32.mxu0 %vm55_vm0, %v34_v12 }
  0x18   :  { %874 = vmatmul.mubr.msk.f32.gmra.mrb[6].mxu0 %vm55_vm0, %v35_v13 }
  0x19   :  { %876 = vmatprep.mubr.msk.f32.mxu0 %vm55_vm0, %v36_v14 }
  0x1c   :  { %877 = vmatmul.mubr.msk.f32.gmra.mrb[8].mxu0 %vm55_vm0, %v37_v15 }
  0x1d   :  { %879 = vmatprep.mubr.msk.f32.mxu0 %vm55_vm0, %v38_v16 }
  0x20   :  { %880 = vmatmul.mubr.msk.f32.gmra.mrb[10].mxu0 %vm55_vm0, %v39_v17 }
  0x21   :  { %882 = vmatprep.mubr.msk.f32.mxu0 %vm55_vm0, %v40_v18 }
  0x24   :  { %883 = vmatmul.mubr.msk.f32.gmra.mrb[12].mxu0 %vm55_vm0, %v41_v19 }
  0x25   :  { %885 = vmatprep.mubr.msk.f32.mxu0 %vm55_vm0, %v42_v20 }
  0x28   :  { %886 = vmatmul.mubr.msk.f32.gmra.mrb[14].mxu0 %vm55_vm0, %v43_v21 }
  0xdf   :  { %v866_v29 = vpop.f32.mrb[0].mxu0 }
  0xe0   :  { %v176_v30 = vadd.f32 %v866_v29, %v1093_v28  ;;  %v170_v31 = vpop.f32.mrb[1].mxu0 }
  0xe1   :  { %v171_v32 = vadd.f32 %v1093_v28, %v170_v31 }
  0xe2   :  { %v266_v33 = vmul.f32 0.01, %v176_v30  ;;  %vm250_vm1 = vcmp.gt.f32.partialorder %v176_v30, 0.0 }
  0xe3   :  { %v869_v34 = vpop.f32.mrb[2].mxu0  ;;  %vm249_vm2 = vcmp.gt.f32.partialorder %v171_v32, 0.0  ;;  %v265_v35 = vmul.f32 0.01, %v171_v32 }
  0xe4   :  { %v186_v36 = vadd.f32 %v869_v34, %v1093_v28  ;;  %v180_v37 = vpop.f32.mrb[3].mxu0  ;;  %v282_v41 = vsel %vm250_vm1, %v176_v30, %v266_v33 }
  0xe5   :  { %v181_v38 = vadd.f32 %v1093_v28, %v180_v37  ;;  %v281_v39 = vsel %vm249_vm2, %v171_v32, %v265_v35  ;;  %v1137_v35 = vld [vmem:[%s1260_s5] ss:$0 sm:$0xff] }
  0xe6   :  { %v268_v40 = vmul.f32 0.01, %v186_v36  ;;  %896 = vmatprep.mubr.msk.f32.mxu1 %vm55_vm0, %v281_v39  ;;  %vm252_vm3 = vcmp.gt.f32.partialorder %v186_v36, 0.0 }
  0xe7   :  { %vm251_vm4 = vcmp.gt.f32.partialorder %v181_v38, 0.0  ;;  %v267_v42 = vmul.f32 0.01, %v181_v38  ;;  %v872_v43 = vpop.f32.mrb[4].mxu0  ;;  %897 = vmatmul.mubr.msk.f32.vlgmr.msra.gmra.mrb[0].mxu1 %vm55_vm0, %v282_v41 }
  0xe8   :  { %v196_v44 = vadd.f32 %v872_v43, %v1093_v28  ;;  %v190_v45 = vpop.f32.mrb[5].mxu0  ;;  %v284_v49 = vsel %vm252_vm3, %v186_v36, %v268_v40 }
  0xe9   :  { %v191_v46 = vadd.f32 %v1093_v28, %v190_v45  ;;  %v283_v47 = vsel %vm251_vm4, %v181_v38, %v267_v42 }
  0xea   :  { %v270_v48 = vmul.f32 0.01, %v196_v44  ;;  %899 = vmatprep.mubr.msk.f32.mxu1 %vm55_vm0, %v283_v47  ;;  %vm254_vm5 = vcmp.gt.f32.partialorder %v196_v44, 0.0 }
  0xeb   :  { %vm253_vm6 = vcmp.gt.f32.partialorder %v191_v46, 0.0  ;;  %v269_v50 = vmul.f32 0.01, %v191_v46  ;;  %v875_v51 = vpop.f32.mrb[6].mxu0  ;;  %900 = vmatmul.mubr.msk.f32.gmra.mrb[2].mxu1 %vm55_vm0, %v284_v49 }
  0xec   :  { %v206_v52 = vadd.f32 %v875_v51, %v1093_v28  ;;  %v200_v53 = vpop.f32.mrb[7].mxu0  ;;  %v286_v57 = vsel %vm254_vm5, %v196_v44, %v270_v48 }
  0xed   :  { %v201_v54 = vadd.f32 %v1093_v28, %v200_v53  ;;  %v285_v55 = vsel %vm253_vm6, %v191_v46, %v269_v50 }
  0xee   :  { %v272_v56 = vmul.f32 0.01, %v206_v52  ;;  %902 = vmatprep.mubr.msk.f32.mxu1 %vm55_vm0, %v285_v55  ;;  %vm256_vm7 = vcmp.gt.f32.partialorder %v206_v52, 0.0 }
  0xef   :  { %vm255_vm8 = vcmp.gt.f32.partialorder %v201_v54, 0.0  ;;  %v271_v58 = vmul.f32 0.01, %v201_v54  ;;  %v878_v59 = vpop.f32.mrb[8].mxu0  ;;  %903 = vmatmul.mubr.msk.f32.gmra.mrb[4].mxu1 %vm55_vm0, %v286_v57 }
  0xf0   :  { %v216_v60 = vadd.f32 %v878_v59, %v1093_v28  ;;  %v210_v61 = vpop.f32.mrb[9].mxu0  ;;  %v288_v1 = vsel %vm256_vm7, %v206_v52, %v272_v56 }
  0xf1   :  { %v211_v62 = vadd.f32 %v1093_v28, %v210_v61  ;;  %v287_v63 = vsel %vm255_vm8, %v201_v54, %v271_v58 }
  0xf2   :  { %v274_v0 = vmul.f32 0.01, %v216_v60  ;;  %905 = vmatprep.mubr.msk.f32.mxu1 %vm55_vm0, %v287_v63  ;;  %vm258_vm9 = vcmp.gt.f32.partialorder %v216_v60, 0.0 }
  0xf3   :  { %vm257_vm10 = vcmp.gt.f32.partialorder %v211_v62, 0.0  ;;  %v273_v2 = vmul.f32 0.01, %v211_v62  ;;  %v881_v3 = vpop.f32.mrb[10].mxu0  ;;  %906 = vmatmul.mubr.msk.f32.gmra.mrb[6].mxu1 %vm55_vm0, %v288_v1 }
  0xf4   :  { %v226_v4 = vadd.f32 %v881_v3, %v1093_v28  ;;  %v220_v5 = vpop.f32.mrb[11].mxu0  ;;  %v290_v9 = vsel %vm258_vm9, %v216_v60, %v274_v0 }
  0xf5   :  { %v221_v6 = vadd.f32 %v1093_v28, %v220_v5  ;;  %v289_v7 = vsel %vm257_vm10, %v211_v62, %v273_v2 }
  0xf6   :  { %v276_v8 = vmul.f32 0.01, %v226_v4  ;;  %908 = vmatprep.mubr.msk.f32.mxu1 %vm55_vm0, %v289_v7  ;;  %vm260_vm11 = vcmp.gt.f32.partialorder %v226_v4, 0.0 }
  0xf7   :  { %vm259_vm12 = vcmp.gt.f32.partialorder %v221_v6, 0.0  ;;  %v275_v10 = vmul.f32 0.01, %v221_v6  ;;  %v884_v11 = vpop.f32.mrb[12].mxu0  ;;  %909 = vmatmul.mubr.msk.f32.gmra.mrb[8].mxu1 %vm55_vm0, %v290_v9 }
  0xf8   :  { %v236_v12 = vadd.f32 %v884_v11, %v1093_v28  ;;  %v230_v13 = vpop.f32.mrb[13].mxu0  ;;  %v292_v17 = vsel %vm260_vm11, %v226_v4, %v276_v8 }
  0xf9   :  { %v231_v14 = vadd.f32 %v1093_v28, %v230_v13  ;;  %v291_v15 = vsel %vm259_vm12, %v221_v6, %v275_v10 }
  0xfa   :  { %v278_v16 = vmul.f32 0.01, %v236_v12  ;;  %911 = vmatprep.mubr.msk.f32.mxu1 %vm55_vm0, %v291_v15  ;;  %vm262_vm13 = vcmp.gt.f32.partialorder %v236_v12, 0.0 }
  0xfb   :  { %vm261_vm14 = vcmp.gt.f32.partialorder %v231_v14, 0.0  ;;  %v277_v18 = vmul.f32 0.01, %v231_v14  ;;  %v887_v19 = vpop.f32.mrb[14].mxu0  ;;  %912 = vmatmul.mubr.msk.f32.gmra.mrb[10].mxu1 %vm55_vm0, %v292_v17 }
  0xfc   :  { %v246_v20 = vadd.f32 %v887_v19, %v1093_v28  ;;  %v240_v21 = vpop.f32.mrb[15].mxu0  ;;  %v294_v25 = vsel %vm262_vm13, %v236_v12, %v278_v16 }
  0xfd   :  { %v241_v22 = vadd.f32 %v1093_v28, %v240_v21  ;;  %v293_v23 = vsel %vm261_vm14, %v231_v14, %v277_v18  ;;  %v1130_v28 = vld [vmem:[%s1259_s4] ss:$0 sm:$0xff] }
  0xfe   :  { %v280_v24 = vmul.f32 0.01, %v246_v20  ;;  %914 = vmatprep.mubr.msk.f32.mxu1 %vm55_vm0, %v293_v23  ;;  %vm264_vm15 = vcmp.gt.f32.partialorder %v246_v20, 0.0 }
  0xff   :  { %vm263_vm1 = vcmp.gt.f32.partialorder %v241_v22, 0.0  ;;  %v279_v26 = vmul.f32 0.01, %v241_v22  ;;  %915 = vmatmul.mubr.msk.f32.gmra.mrb[12].mxu1 %vm55_vm0, %v294_v25 }
 0x100   :  { %v296_v29 = vsel %vm264_vm15, %v246_v20, %v280_v24 }
 0x101   :  { %v295_v27 = vsel %vm263_vm1, %v241_v22, %v279_v26 }
 0x102   :  { %917 = vmatprep.mubr.msk.f32.mxu1 %vm55_vm0, %v295_v27 }
 0x103   :  { %918 = vmatmul.mubr.msk.f32.gmra.mrb[14].mxu1 %vm55_vm0, %v296_v29 }
 0x1ba   :  { %v898_v30 = vpop.f32.mrb[0].mxu1 }
 0x1bb   :  { %v428_v31 = vadd.f32 %v898_v30, %v1130_v28  ;;  %v422_v32 = vpop.f32.mrb[1].mxu1 }
 0x1bc   :  { %v423_v33 = vadd.f32 %v1130_v28, %v422_v32 }
 0x1bd   :  { %v518_v34 = vmul.f32 0.01, %v428_v31  ;;  %vm502_vm2 = vcmp.gt.f32.partialorder %v428_v31, 0.0 }
 0x1be   :  { %vm501_vm3 = vcmp.gt.f32.partialorder %v423_v33, 0.0  ;;  %v517_v36 = vmul.f32 0.01, %v423_v33  ;;  %v901_v37 = vpop.f32.mrb[2].mxu1 }
 0x1bf   :  { %v438_v38 = vadd.f32 %v901_v37, %v1130_v28  ;;  %v432_v39 = vpop.f32.mrb[3].mxu1  ;;  %v534_v40 = vsel %vm502_vm2, %v428_v31, %v518_v34 }
 0x1c0   :  { %v433_v41 = vadd.f32 %v1130_v28, %v432_v39  ;;  %v557_v42 = vmul.f32 %v1137_v35, %v534_v40  ;;  %v533_v43 = vsel %vm501_vm3, %v423_v33, %v517_v36  ;;  %vm672_vm3 = vcmask 195712  }
 0x1c1   :  { %v520_v44 = vmul.f32 0.01, %v438_v38  ;;  %vm504_vm4 = vcmp.gt.f32.partialorder %v438_v38, 0.0  ;;  %v556_v45 = vmul.f32 %v1137_v35, %v533_v43 }
 0x1c2   :  { %vm503_vm5 = vcmp.gt.f32.partialorder %v433_v41, 0.0  ;;  %v519_v46 = vmul.f32 0.01, %v433_v41  ;;  %v904_v47 = vpop.f32.mrb[4].mxu1  ;;  %v575_v48 = vsel %vm55_vm0, %v557_v42, 0.0 }
 0x1c3   :  { %v448_v49 = vadd.f32 %v904_v47, %v1130_v28  ;;  %576 = vadd.xlane.f32.xlu0 %v575_v48  ;;  %v442_v50 = vpop.f32.mrb[5].mxu1  ;;  %v536_v51 = vsel %vm504_vm4, %v438_v38, %v520_v44  ;;  %v572_v56 = vsel %vm55_vm0, %v556_v45, 0.0  ;;  %vm679_vm4 = vcmask 261312  }
 0x1c4   :  { %v443_v52 = vadd.f32 %v1130_v28, %v442_v50  ;;  %v559_v53 = vmul.f32 %v1137_v35, %v536_v51  ;;  %v535_v54 = vsel %vm503_vm5, %v433_v41, %v519_v46  ;;  %vm686_vm5 = vcmask 326912  }
 0x1c5   :  { %vm506_vm6 = vcmp.gt.f32.partialorder %v448_v49, 0.0  ;;  %v522_v55 = vmul.f32 0.01, %v448_v49  ;;  %v558_v60 = vmul.f32 %v1137_v35, %v535_v54 }
 0x1c6   :  { %vm505_vm7 = vcmp.gt.f32.partialorder %v443_v52, 0.0  ;;  %v521_v57 = vmul.f32 0.01, %v443_v52  ;;  %v907_v58 = vpop.f32.mrb[6].mxu1  ;;  %v581_v59 = vsel %vm55_vm0, %v559_v53, 0.0 }
 0x1c7   :  { %v458_v61 = vadd.f32 %v907_v58, %v1130_v28  ;;  %582 = vadd.xlane.f32.xlu1 %v581_v59  ;;  %v452_v62 = vpop.f32.mrb[7].mxu1  ;;  %573 = vadd.xlane.f32.xlu0 %v572_v56  ;;  %v538_v63 = vsel %vm506_vm6, %v448_v49, %v522_v55  ;;  %v578_v6 = vsel %vm55_vm0, %v558_v60, 0.0  ;;  %vm693_vm6 = vcmask 392512  }
 0x1c8   :  { %v453_v0 = vadd.f32 %v1130_v28, %v452_v62  ;;  %v537_v1 = vsel %vm505_vm7, %v443_v52, %v521_v57  ;;  %v561_v7 = vmul.f32 %v1137_v35, %v538_v63  ;;  %vm700_vm7 = vcmask 458112  }
 0x1c9   :  { %vm508_vm8 = vcmp.gt.f32.partialorder %v458_v61, 0.0  ;;  %v524_v2 = vmul.f32 0.01, %v458_v61  ;;  %v560_v3 = vmul.f32 %v1137_v35, %v537_v1 }
 0x1ca   :  { %vm507_vm9 = vcmp.gt.f32.partialorder %v453_v0, 0.0  ;;  %v523_v4 = vmul.f32 0.01, %v453_v0  ;;  %v910_v5 = vpop.f32.mrb[8].mxu1  ;;  %v587_v18 = vsel %vm55_vm0, %v561_v7, 0.0 }
 0x1cb   :  { %v468_v8 = vadd.f32 %v910_v5, %v1130_v28  ;;  %v462_v9 = vpop.f32.mrb[9].mxu1  ;;  %579 = vadd.xlane.f32.xlu1 %v578_v6  ;;  %v584_v10 = vsel %vm55_vm0, %v560_v3, 0.0  ;;  %v540_v11 = vsel %vm508_vm8, %v458_v61, %v524_v2  ;;  %v1193_v5 = vstv %s1261_s6  ;;  %s961_s6 = smov [#allocation3]  }
 0x1cc   :  { %v463_v12 = vadd.f32 %v1130_v28, %v462_v9  ;;  %585 = vadd.xlane.f32.xlu0 %v584_v10  ;;  %v539_v13 = vsel %vm507_vm9, %v453_v0, %v523_v4  ;;  %v563_v19 = vmul.f32 %v1137_v35, %v540_v11  ;;  %v654_v0 = vlaneseq  ;;  %s773_s27 = sshll.u32 %s961_s6, 4  ;;  %s774_s27 = int_to_ptr.vmem [resolvable:$true] %s773_s27 }
 0x1cd   :  { %vm510_vm10 = vcmp.gt.f32.partialorder %v468_v8, 0.0  ;;  %v526_v14 = vmul.f32 0.01, %v468_v8  ;;  %v562_v15 = vmul.f32 %v1137_v35, %v539_v13  ;;  %vm707_vm8 = vcmask 523712   ;;  %s937_s28 = scalar_lea.vmem %s774_s27, 16  ;;  %s941_s29 = scalar_lea.vmem %s774_s27, 32 }
 0x1ce   :  { %vm509_vm11 = vcmp.gt.f32.partialorder %v463_v12, 0.0  ;;  %v525_v16 = vmul.f32 0.01, %v463_v12  ;;  %v913_v17 = vpop.f32.mrb[10].mxu1  ;;  %v593_v31 = vsel %vm55_vm0, %v563_v19, 0.0  ;;  %v1185_v1 = vand.u32 127, %v654_v0  ;;  %p938_p0 = scmp.ne.s32.totalorder %s774_s27, %s937_s28  ;;  %p942_p1 = scmp.lt.s32.totalorder %s774_s27, %s774_s27 }
 0x1cf   :  { %v478_v20 = vadd.f32 %v913_v17, %v1130_v28  ;;  %v472_v21 = vpop.f32.mrb[11].mxu1  ;;  %588 = vadd.xlane.f32.xlu1 %v587_v18  ;;  %v590_v22 = vsel %vm55_vm0, %v562_v15, 0.0  ;;  %v542_v23 = vsel %vm510_vm10, %v468_v8, %v526_v14  ;;  %v1187_v3 = vshrl.u32 %v654_v0, 7  ;;  %p943_p2 = scmp.lt.s32.totalorder %s941_s29, %s937_s28 }
 0x1d0   :  { %v473_v24 = vadd.f32 %v1130_v28, %v472_v21  ;;  %591 = vadd.xlane.f32.xlu0 %v590_v22  ;;  %v541_v25 = vsel %vm509_vm11, %v463_v12, %v525_v16  ;;  %v565_v32 = vmul.f32 %v1137_v35, %v542_v23  ;;  %v660_v4 = vadd.s32 4294967288, %v1185_v1 }
 0x1d1   :  { %vm512_vm12 = vcmp.gt.f32.partialorder %v478_v20, 0.0  ;;  %v528_v26 = vmul.f32 0.01, %v478_v20  ;;  %v564_v27 = vmul.f32 %v1137_v35, %v541_v25  ;;  %v674_v6 = vadd.s32 4294967272, %v1185_v1  ;;  %p944_p3 = por %p943_p2, %p942_p1 }
 0x1d2   :  { %vm511_vm13 = vcmp.gt.f32.partialorder %v473_v24, 0.0  ;;  %v527_v29 = vmul.f32 0.01, %v473_v24  ;;  %v916_v30 = vpop.f32.mrb[12].mxu1  ;;  %v599_v44 = vsel %vm55_vm0, %v565_v32, 0.0  ;;  %v658_v8 = vsub.s32 %v1185_v1, %v1187_v3 }
 0x1d3   :  { %v488_v33 = vadd.f32 %v916_v30, %v1130_v28  ;;  %v482_v34 = vpop.f32.mrb[13].mxu1  ;;  %594 = vadd.xlane.f32.xlu1 %v593_v31  ;;  %v596_v36 = vsel %vm55_vm0, %v564_v27, 0.0  ;;  %v544_v37 = vsel %vm512_vm12, %v478_v20, %v528_v26  ;;  %v681_v10 = vadd.s32 4294967264, %v1185_v1  ;;  %p945_p4 = pnand %p944_p3, %p938_p0 }
 0x1d4   :  { %v483_v38 = vadd.f32 %v1130_v28, %v482_v34  ;;  %597 = vadd.xlane.f32.xlu0 %v596_v36  ;;  %v543_v39 = vsel %vm511_vm13, %v473_v24, %v527_v29  ;;  %v567_v45 = vmul.f32 %v1137_v35, %v544_v37  ;;  %v663_v12 = vsub.s32 %v660_v4, %v1187_v3 }
 0x1d5   :  { %vm514_vm14 = vcmp.gt.f32.partialorder %v488_v33, 0.0  ;;  %v530_v40 = vmul.f32 0.01, %v488_v33  ;;  %v566_v41 = vmul.f32 %v1137_v35, %v543_v39  ;;  %v688_v14 = vadd.s32 4294967256, %v1185_v1 }
 0x1d6   :  { %vm513_vm15 = vcmp.gt.f32.partialorder %v483_v38, 0.0  ;;  %v529_v42 = vmul.f32 0.01, %v483_v38  ;;  %v919_v43 = vpop.f32.mrb[14].mxu1  ;;  %v605_v55 = vsel %vm55_vm0, %v567_v45, 0.0  ;;  %v695_v16 = vadd.s32 4294967248, %v1185_v1 }
 0x1d7   :  { %v498_v46 = vadd.f32 %v919_v43, %v1130_v28  ;;  %v492_v47 = vpop.f32.mrb[15].mxu1  ;;  %600 = vadd.xlane.f32.xlu1 %v599_v44  ;;  %v602_v48 = vsel %vm55_vm0, %v566_v41, 0.0  ;;  %v546_v49 = vsel %vm514_vm14, %v488_v33, %v530_v40  ;;  %v677_v17 = vsub.s32 %v674_v6, %v1187_v3 }
 0x1d8   :  { %v493_v50 = vadd.f32 %v1130_v28, %v492_v47  ;;  %603 = vadd.xlane.f32.xlu0 %v602_v48  ;;  %v545_v51 = vsel %vm513_vm15, %v483_v38, %v529_v42  ;;  %v569_v56 = vmul.f32 %v1137_v35, %v546_v49  ;;  %v684_v21 = vsub.s32 %v681_v10, %v1187_v3 }
 0x1d9   :  { %vm516_vm1 = vcmp.gt.f32.partialorder %v498_v46, 0.0  ;;  %v532_v52 = vmul.f32 0.01, %v498_v46  ;;  %v568_v53 = vmul.f32 %v1137_v35, %v545_v51  ;;  %v691_v26 = vsub.s32 %v688_v14, %v1187_v3 }
 0x1da   :  { %vm515_vm2 = vcmp.gt.f32.partialorder %v493_v50, 0.0  ;;  %v531_v54 = vmul.f32 0.01, %v493_v50  ;;  %v611_v60 = vsel %vm55_vm0, %v569_v56, 0.0  ;;  %v698_v29 = vsub.s32 %v695_v16, %v1187_v3 }
 0x1db   :  { %606 = vadd.xlane.f32.xlu1 %v605_v55  ;;  %v608_v57 = vsel %vm55_vm0, %v568_v53, 0.0  ;;  %v548_v58 = vsel %vm516_vm1, %v498_v46, %v532_v52  ;;  %v702_v30 = vadd.s32 4294967240, %v1185_v1  ;;  %v709_v36 = vadd.s32 4294967232, %v1185_v1 }
 0x1dc   :  { %609 = vadd.xlane.f32.xlu0 %v608_v57  ;;  %v547_v59 = vsel %vm515_vm2, %v493_v50, %v531_v54  ;;  %v571_v61 = vmul.f32 %v1137_v35, %v548_v58  ;;  %v716_v45 = vadd.s32 4294967224, %v1185_v1  ;;  %v723_v49 = vadd.s32 4294967216, %v1185_v1 }
 0x1dd   :  { %v570_v28 = vmul.f32 %v1137_v35, %v547_v59  ;;  %v667_v35 = vadd.s32 4294967280, %v1185_v1  ;;  %v705_v44 = vsub.s32 %v702_v30, %v1187_v3  ;;  %v712_v48 = vsub.s32 %v709_v36, %v1187_v3 }
 0x1de   :  { %v617_v63 = vsel %vm55_vm0, %v571_v61, 0.0  ;;  %v719_v55 = vsub.s32 %v716_v45, %v1187_v3  ;;  %v730_v56 = vadd.s32 4294967208, %v1185_v1  ;;  %vm714_vm9 = vcmask 589312  }
 0x1df   :  { %612 = vadd.xlane.f32.xlu1 %v611_v60  ;;  %v614_v62 = vsel %vm55_vm0, %v570_v28, 0.0  ;;  %v670_v15 = vsub.s32 %v667_v35, %v1187_v3  ;;  %vm665_vm0 = vcmask 130112   ;;  %v726_v28 = vsub.s32 %v723_v49, %v1187_v3 }
 0x1e0   :  { %615 = vadd.xlane.f32.xlu0 %v614_v62  ;;  %v737_v60 = vadd.s32 4294967200, %v1185_v1  ;;  %vm721_vm10 = vcmask 654912   ;;  %v733_v4 = vsub.s32 %v730_v56, %v1187_v3  ;;  %v744_v35 = vadd.s32 4294967192, %v1185_v1 }
 0x1e1   :  { %v751_v10 = vadd.s32 4294967184, %v1185_v1  ;;  %vm728_vm11 = vcmask 720512   ;;  %vm735_vm12 = vcmask 786112   ;;  %vm742_vm13 = vcmask 851712  }
 0x1e2   :  { %v747_v16 = vsub.s32 %v744_v35, %v1187_v3  ;;  %vm749_vm14 = vcmask 917312   ;;  %vm756_vm15 = vcmask 982912   ;;  %vm763_vm1 = vcmask 1048512  }
 0x1e3   :  { %618 = vadd.xlane.f32.xlu1 %v617_v63 }
 0x250   :  { %v577_v2 = vpop.xlane.xlu0 %576 }
 0x251   :  { %v623_v13 = vadd.f32 %v1193_v5, %v577_v2 }
 0x253   :  { %v664_v24 = vrot.slane %v623_v13, %v663_v12 }
 0x254   :  { %v583_v7 = vpop.xlane.xlu1 %582  ;;  %v574_v9 = vpop.xlane.xlu0 %573 }
 0x255   :  { %v622_v11 = vadd.f32 %v1193_v5, %v574_v9  ;;  %v625_v18 = vadd.f32 %v1193_v5, %v583_v7  ;;  %v740_v9 = vsub.s32 %v737_v60, %v1187_v3 }
 0x257   :  { %v659_v19 = vrot.slane %v622_v11, %v658_v8  ;;  %v678_v31 = vrot.slane %v625_v18, %v677_v17  ;;  %v758_v17 = vadd.s32 4294967176, %v1185_v1 }
 0x258   :  { %v580_v20 = vpop.xlane.xlu1 %579 }
 0x259   :  { %v624_v22 = vadd.f32 %v1193_v5, %v580_v20  ;;  %v586_v23 = vpop.xlane.xlu0 %585  ;;  %v666_v32 = vsel %vm665_vm0, %v664_v24, %v659_v19 }
 0x25a   :  { %v626_v25 = vadd.f32 %v1193_v5, %v586_v23 }
 0x25b   :  { %v671_v27 = vrot.slane %v624_v22, %v670_v15 }
 0x25c   :  { %v685_v33 = vrot.slane %v626_v25, %v684_v21  ;;  %v589_v34 = vpop.xlane.xlu1 %588  ;;  %v754_v21 = vsub.s32 %v751_v10, %v1187_v3 }
 0x25d   :  { %v673_v37 = vsel %vm672_vm3, %v671_v27, %v666_v32  ;;  %v627_v38 = vadd.f32 %v1193_v5, %v589_v34  ;;  %v592_v39 = vpop.xlane.xlu0 %591  ;;  %v761_v27 = vsub.s32 %v758_v17, %v1187_v3 }
 0x25e   :  { %v680_v40 = vsel %vm679_vm4, %v678_v31, %v673_v37  ;;  %v628_v41 = vadd.f32 %v1193_v5, %v592_v39 }
 0x25f   :  { %v687_v42 = vsel %vm686_vm5, %v685_v33, %v680_v40  ;;  %v692_v43 = vrot.slane %v627_v38, %v691_v26 }
 0x260   :  { %v699_v46 = vrot.slane %v628_v41, %v698_v29  ;;  %v595_v47 = vpop.xlane.xlu1 %594 }
 0x261   :  { %v694_v50 = vsel %vm693_vm6, %v692_v43, %v687_v42  ;;  %v629_v51 = vadd.f32 %v1193_v5, %v595_v47  ;;  %v598_v52 = vpop.xlane.xlu0 %597 }
 0x262   :  { %v630_v53 = vadd.f32 %v1193_v5, %v598_v52  ;;  %v701_v57 = vsel %vm700_vm7, %v699_v46, %v694_v50 }
 0x263   :  { %v706_v54 = vrot.slane %v629_v51, %v705_v44 }
 0x264   :  { %v713_v58 = vrot.slane %v630_v53, %v712_v48  ;;  %v601_v59 = vpop.xlane.xlu1 %600 }
 0x265   :  { %v708_v61 = vsel %vm707_vm8, %v706_v54, %v701_v57  ;;  %v631_v62 = vadd.f32 %v1193_v5, %v601_v59  ;;  %v604_v63 = vpop.xlane.xlu0 %603 }
 0x266   :  { %v632_v0 = vadd.f32 %v1193_v5, %v604_v63  ;;  %v715_v6 = vsel %vm714_vm9, %v713_v58, %v708_v61 }
 0x267   :  { %v720_v2 = vrot.slane %v631_v62, %v719_v55 }
 0x268   :  { %v727_v7 = vrot.slane %v632_v0, %v726_v28  ;;  %v607_v8 = vpop.xlane.xlu1 %606 }
 0x269   :  { %v722_v11 = vsel %vm721_vm10, %v720_v2, %v715_v6  ;;  %v633_v12 = vadd.f32 %v1193_v5, %v607_v8  ;;  %v610_v13 = vpop.xlane.xlu0 %609 }
 0x26a   :  { %v634_v14 = vadd.f32 %v1193_v5, %v610_v13  ;;  %v729_v18 = vsel %vm728_vm11, %v727_v7, %v722_v11 }
 0x26b   :  { %v734_v15 = vrot.slane %v633_v12, %v733_v4 }
 0x26c   :  { %v741_v19 = vrot.slane %v634_v14, %v740_v9  ;;  %v613_v20 = vpop.xlane.xlu1 %612 }
 0x26d   :  { %v736_v22 = vsel %vm735_vm12, %v734_v15, %v729_v18  ;;  %v635_v23 = vadd.f32 %v1193_v5, %v613_v20  ;;  %v616_v24 = vpop.xlane.xlu0 %615 }
 0x26e   :  { %v636_v25 = vadd.f32 %v1193_v5, %v616_v24  ;;  %v743_v29 = vsel %vm742_vm13, %v741_v19, %v736_v22 }
 0x26f   :  { %v748_v26 = vrot.slane %v635_v23, %v747_v16 }
 0x270   :  { %v755_v30 = vrot.slane %v636_v25, %v754_v21  ;;  %v619_v31 = vpop.xlane.xlu1 %618 }
 0x271   :  { %v637_v1 = vadd.f32 %v1193_v5, %v619_v31  ;;  %v750_v32 = vsel %vm749_vm14, %v748_v26, %v743_v29 }
 0x272   :  { %v757_v34 = vsel %vm756_vm15, %v755_v30, %v750_v32 }
 0x273   :  { %v762_v33 = vrot.slane %v637_v1, %v761_v27 }
 0x275   :  { %v764_v36 = vsel %vm763_vm1, %v762_v33, %v757_v34 }
 0x276   :  { %766 = vst [vmem:[#allocation3] sm:$0x1] %v764_v36 }
 0x277   :  { %948 = shalt.err (!%p945_p4)
}
 0x278   :  { %s949_s9 = scalar_lea.hbm %s1262_s7, 16 }
 0x279   :  { %p950_p5 = scmp.ne.s32.totalorder %s1262_s7, %s949_s9  ;;  %p953_p6 = scmp.lt.u32.totalorder %s949_s9, %s1262_s7 }
 0x27b   :  { %p955_p7 = pnand %p953_p6, %p950_p5 }
 0x27d   :  { %958 = shalt.err (!%p955_p7)
}
 0x27e   :  { %776 = dma.vmem_to_hbm [thread:$0]  %s774_s27, 16, %s1262_s7, [#allocation4]  }
 0x27f   :  { %959 = dma.done.wait [#allocation4], 16  }
 0x280   :  { %960 = vsyncadd [#allocation4], 4294967280 }
 0x281   :  { %780 = vsyncpa [#allocation4], 1 }

</bundles_post_ra>
